<compile_context>
chip_gen: v5e
topology: v5e:2x2
jax: 0.10.0
libtpu: 0.0.40
codegen_flags: <defaults>
</compile_context>

<pallas_src>
import functools

import jax
import jax.numpy as jnp
from jax.experimental import pallas as pl
from jax.experimental.pallas import tpu as pltpu


def _round_up(x, m):
    return (x + m - 1) // m * m


# ----------------------------------------------------------------------------
# Kernel
# ----------------------------------------------------------------------------
def logic_combine_kernel(src_ref, tgt_ref, tri_ref, tn_ref, sq_ref, sn_ref,
                         w_ref, b_ref, out_ref, *, in_size, lw, segs, ksz):
    """Fused LogicCombineHG forward (concat + triangle & square branch).

    src_ref/tgt_ref : (TB, in_size)            operand dtype (bf16/f32)
    tri_ref         : (TB, in_size*tri_num*2)  operand dtype
    tn_ref          : (TB, in_size*tri_num)    operand dtype
    sq_ref          : (TB, in_size*sq_num*2)   operand dtype
    sn_ref          : (TB, in_size*sq_num)     operand dtype
    w_ref           : (R, lw)   packed weight slab (see pack_params)
    b_ref           : (8, lw)   f32 packed bias slab (rows 0..3 used)
    out_ref         : (TB, lw)  lane-padded sigmoid output (lanes < out_size valid)
    """
    f32 = jnp.float32
    cdt = w_ref.dtype
    k1, k2, k3, k4 = ksz

    src = src_ref[...]
    tgt = tgt_ref[...]
    p = src * tgt                                     # VPU, operand dtype

    # --- four _Fcombine first layers: four lane-disjoint partial dots.  Each
    # weight segment only populates lanes [i*ce:(i+1)*ce], so the sum is
    # bit-identical to one block-diagonal K=sum(k_i) matmul (f32 accumulate).
    hid = jnp.dot(tri_ref[...], w_ref[segs['tri']:segs['tri'] + k1, :],
                  preferred_element_type=f32)
    hid = hid + jnp.dot(tn_ref[...], w_ref[segs['tn']:segs['tn'] + k2, :],
                        preferred_element_type=f32)
    hid = hid + jnp.dot(sq_ref[...], w_ref[segs['sq']:segs['sq'] + k3, :],
                        preferred_element_type=f32)
    hid = hid + jnp.dot(sn_ref[...], w_ref[segs['sn']:segs['sn'] + k4, :],
                        preferred_element_type=f32)
    hid = jnp.maximum(hid + b_ref[0:1, :], 0.0)       # (TB, lw) f32

    # --- four _Fcombine second layers: one block-diagonal matmul.
    # Result lanes: [te | tne | se | sne] in reference concat order.
    mlp = jnp.dot(hid.astype(cdt), w_ref[segs['ws']:segs['ws'] + lw, :],
                  preferred_element_type=f32) + b_ref[1:2, :]

    # --- Fout layer 1: concat([s, t, s*t, te|tne|se|sne]) @ wo1 as four dots.
    h = b_ref[2:3, :]
    h = h + jnp.dot(src, w_ref[segs['w1s']:segs['w1s'] + in_size, :],
                    preferred_element_type=f32)
    h = h + jnp.dot(tgt, w_ref[segs['w1t']:segs['w1t'] + in_size, :],
                    preferred_element_type=f32)
    h = h + jnp.dot(p, w_ref[segs['w1p']:segs['w1p'] + in_size, :],
                    preferred_element_type=f32)
    h = h + jnp.dot(mlp.astype(cdt), w_ref[segs['w1m']:segs['w1m'] + lw, :],
                    preferred_element_type=f32)
    h = jnp.maximum(h, 0.0)                           # (TB, lw); lanes >= ce are 0

    # --- Fout layer 2 + sigmoid (lane-dense, padded to lw lanes).
    logits = jnp.dot(h.astype(cdt), w_ref[segs['w2']:segs['w2'] + lw, :],
                     preferred_element_type=f32) + b_ref[3:4, :]
    out_ref[...] = jax.nn.sigmoid(logits).astype(out_ref.dtype)


# ----------------------------------------------------------------------------
# Parameter packing (wrapper-side, plain JAX, done once)
# ----------------------------------------------------------------------------
def pack_params(params, *, in_size, ce, out_size, tri_num, sq_num, param_dtype):
    (w1a, b1a, w1b, b1b, w2a, b2a, w2b, b2b,
     w3a, b3a, w3b, b3b, w4a, b4a, w4b, b4b,
     wo1, bo1, wo2, bo2) = params

    lw = 4 * ce
    k1 = in_size * tri_num * 2
    k2 = in_size * tri_num
    k3 = in_size * sq_num * 2
    k4 = in_size * sq_num

    def lane_block(w, blk):
        """Place a (k, ce) weight into a (k, lw) slab at lane block `blk`."""
        z = jnp.zeros((w.shape[0], lw), jnp.float32)
        return z.at[:, blk * ce:(blk + 1) * ce].set(w)

    parts, segs, cur = [], {}, 0

    def add(name, mat):
        nonlocal cur
        segs[name] = cur
        parts.append(mat)
        rows = mat.shape[0]
        padded = _round_up(rows, 8)          # every segment starts 8-row aligned
        if padded != rows:
            parts.append(jnp.zeros((padded - rows, lw), jnp.float32))
        cur += padded

    # _Fcombine{1..4} first layers (lane-disjoint -> partial dots can be summed).
    add('tri', lane_block(w1a, 0))
    add('tn', lane_block(w2a, 1))
    add('sq', lane_block(w3a, 2))
    add('sn', lane_block(w4a, 3))

    # _Fcombine{1..4} second layers as one block-diagonal (lw, lw) matrix.
    ws = jnp.zeros((lw, lw), jnp.float32)
    for i, w in enumerate((w1b, w2b, w3b, w4b)):
        ws = ws.at[i * ce:(i + 1) * ce, i * ce:(i + 1) * ce].set(w)
    add('ws', ws)

    # Fout layer 1 split along its input rows [s | t | s*t | te|tne|se|sne];
    # segments are lane-padded to lw (only lanes [0:ce] non-zero).
    add('w1s', lane_block(wo1[0 * in_size:1 * in_size], 0))
    add('w1t', lane_block(wo1[1 * in_size:2 * in_size], 0))
    add('w1p', lane_block(wo1[2 * in_size:3 * in_size], 0))
    add('w1m', lane_block(wo1[3 * in_size:3 * in_size + lw], 0))

    # Fout layer 2: rows padded to lw (h is lane-padded), lanes padded to lw.
    add('w2', jnp.zeros((lw, lw), jnp.float32).at[:ce, :out_size].set(wo2))

    w_slab = jnp.concatenate(parts, axis=0).astype(param_dtype)

    bf = jnp.concatenate([b1a, b2a, b3a, b4a], axis=1)            # (1, lw)
    bs = jnp.concatenate([b1b, b2b, b3b, b4b], axis=1)            # (1, lw)
    bo1_p = jnp.zeros((1, lw), jnp.float32).at[:, :ce].set(bo1)
    bo2_p = jnp.zeros((1, lw), jnp.float32).at[:, :out_size].set(bo2)
    b_slab = jnp.concatenate([bf, bs, bo1_p, bo2_p,
                              jnp.zeros((4, lw), jnp.float32)], axis=0)  # (8, lw)

    return w_slab, b_slab, segs, (k1, k2, k3, k4)


# ----------------------------------------------------------------------------
# Wrapper
# ----------------------------------------------------------------------------
def logic_combine_hg(source, target, triangle, triangleneighbor,
                     square, squareneighbor, params, *,
                     combine_embed, out_size,
                     operand_dtype=jnp.bfloat16,
                     batch_tile=None, return_padded=False):
    """concat + triangle&square forward.  Default operand dtype is bf16
    (MXU-native on v5e/v6e/v7x, halves the dominant HBM reads); accumulation
    and biases stay f32.  Use operand_dtype=jnp.float32 for exact parity."""
    B, in_size = source.shape
    ce = combine_embed
    assert in_size == ce, "concat path requires in_size == combine_embed"
    lw = 4 * ce
    tri_num = triangle.shape[1] // 2
    sq_num = square.shape[1] // 2

    dt = jnp.dtype(operand_dtype)
    w_slab, b_slab, segs, ksz = pack_params(
        params, in_size=in_size, ce=ce, out_size=out_size,
        tri_num=tri_num, sq_num=sq_num, param_dtype=dt)

    # Separate activation inputs (no wrapper concat / pad).  Each is a free
    # contiguous reshape + a dtype cast that is a no-op if already `dt`.
    src = source.astype(dt)
    tgt = target.astype(dt)
    tri = triangle.reshape(B, -1).astype(dt)
    tn = triangleneighbor.reshape(B, -1).astype(dt)
    sq = square.reshape(B, -1).astype(dt)
    sn = squareneighbor.reshape(B, -1).astype(dt)

    out_dtype = dt          # sigmoid output in [0,1]; bf16 halves the HBM write.

    # Batch tile: large enough to amortize per-step pipeline overhead, but
    # sized so the grid has >= 2 steps when possible (v7x megacore sharding).
    act_bytes = dt.itemsize
    if batch_tile is None:
        cap = 2048 if act_bytes <= 2 else 1024   # f32 tiles capped for v5e VMEM
        batch_tile = max(8, min(cap, _round_up(pl.cdiv(B, 2), 8)))
    TB = batch_tile
    grid = (pl.cdiv(B, TB),)   # ragged last block -> Pallas masks the OOB stores

    # VMEM budget: double-buffered activation/output tiles + resident slabs.
    k_logic = sum(ksz)
    per_row = (2 * in_size + k_logic) * act_bytes + lw * jnp.dtype(out_dtype).itemsize
    resident = w_slab.size * w_slab.dtype.itemsize + b_slab.size * 4
    vmem_needed = 2 * TB * per_row + 2 * resident
    vmem_limit = min(64 << 20, max(32 << 20, int(1.5 * vmem_needed) + (2 << 20)))

    kernel = functools.partial(logic_combine_kernel, in_size=in_size, lw=lw,
                               segs=segs, ksz=ksz)

    def row_spec(width):
        return pl.BlockSpec((TB, width), lambda i: (i, 0))

    # NOTE(perf review): pipeline_mode=pl.Buffered(1) on the two constant-index
    # weight/bias specs would drop their second pipeline buffer (~0.3-0.6 MiB).
    # Deliberately skipped for portability; at these tile sizes total VMEM use
    # (<= ~16 MiB) is far below even the v7x 64 MiB per-core budget.
    out = pl.pallas_call(
        kernel,
        grid=grid,
        in_specs=[
            row_spec(in_size), row_spec(in_size),
            row_spec(tri.shape[1]), row_spec(tn.shape[1]),
            row_spec(sq.shape[1]), row_spec(sn.shape[1]),
            pl.BlockSpec(w_slab.shape, lambda i: (0, 0)),
            pl.BlockSpec(b_slab.shape, lambda i: (0, 0)),
        ],
        out_specs=pl.BlockSpec((TB, lw), lambda i: (i, 0)),
        out_shape=jax.ShapeDtypeStruct((B, lw), out_dtype),
        compiler_params=pltpu.CompilerParams(
            dimension_semantics=("parallel",),
            vmem_limit_bytes=vmem_limit),
    )(src, tgt, tri, tn, sq, sn, w_slab, b_slab)

    if return_padded:
        return out              # (B, lw): lanes [0:out_size] valid, rest = sigmoid(0)
    return out[:, :out_size]


# ----------------------------------------------------------------------------
# Pure-JAX reference (mirrors the PyTorch module)
# ----------------------------------------------------------------------------
def _reference(source, target, triangle, triangleneighbor, square,
               squareneighbor, params):
    (w1a, b1a, w1b, b1b, w2a, b2a, w2b, b2b,
     w3a, b3a, w3b, b3b, w4a, b4a, w4b, b4b,
     wo1, bo1, wo2, bo2) = params

    def mlp(x, wa, ba, wb, bb):
        return jnp.maximum(x @ wa + ba, 0.0) @ wb + bb

    B = source.shape[0]
    te = mlp(triangle.reshape(B, -1), w1a, b1a, w1b, b1b)
    tne = mlp(triangleneighbor.reshape(B, -1), w2a, b2a, w2b, b2b)
    se = mlp(square.reshape(B, -1), w3a, b3a, w3b, b3b)
    sne = mlp(squareneighbor.reshape(B, -1), w4a, b4a, w4b, b4b)
    emb = jnp.concatenate(
        [source, target, source * target, te, tne, se, sne], axis=1)
    h = jnp.maximum(emb @ wo1 + bo1, 0.0)
    return jax.nn.sigmoid(h @ wo2 + bo2)


def _init_linear(key, fan_in, fan_out):
    """Deterministic init mirroring torch.nn.Linear's U(-1/sqrt(in), 1/sqrt(in))."""
    kw, kb = jax.random.split(key)
    bound = 1.0 / (fan_in ** 0.5)
    w = jax.random.uniform(kw, (fan_in, fan_out), jnp.float32, -bound, bound)
    b = jax.random.uniform(kb, (1, fan_out), jnp.float32, -bound, bound)
    return w, b


def _make_inputs(key, B, in_size, tri_num, sq_num):
    ki = jax.random.split(key, 6)
    source = jax.random.normal(ki[0], (B, in_size), jnp.float32)
    target = jax.random.normal(ki[1], (B, in_size), jnp.float32)
    triangle = jax.random.normal(ki[2], (B, tri_num * 2, in_size), jnp.float32)
    triangleneighbor = jax.random.normal(ki[3], (B, tri_num, in_size), jnp.float32)
    square = jax.random.normal(ki[4], (B, sq_num * 2, in_size), jnp.float32)
    squareneighbor = jax.random.normal(ki[5], (B, sq_num, in_size), jnp.float32)
    return source, target, triangle, triangleneighbor, square, squareneighbor


if __name__ == "__main__":
    B = 8
    in_size = 32
    combine_embed = 32          # must equal in_size for the 'concat' path
    trianglelogic_num = 3
    squarelogic_num = 4
    out_size = 1

    key = jax.random.PRNGKey(0)
    keys = jax.random.split(key, 16)

    # parameters (two-layer MLPs, weights stored as (in, out))
    layer_dims = [
        (in_size * trianglelogic_num * 2, combine_embed),  # _Fcombine1 layer1
        (combine_embed, combine_embed),                     # _Fcombine1 layer2
        (in_size * trianglelogic_num, combine_embed),       # _Fcombine2
        (combine_embed, combine_embed),
        (in_size * squarelogic_num * 2, combine_embed),     # _Fcombine3
        (combine_embed, combine_embed),
        (in_size * squarelogic_num, combine_embed),         # _Fcombine4
        (combine_embed, combine_embed),
        (combine_embed * 7, combine_embed),                  # _Fout layer1
        (combine_embed, out_size),                           # _Fout layer2
    ]
    params = []
    for i, (fi, fo) in enumerate(layer_dims):
        w, b = _init_linear(keys[i], fi, fo)
        params.extend([w, b])
    params = tuple(params)

    inputs = _make_inputs(keys[-1], B, in_size, trianglelogic_num, squarelogic_num)
    ref = _reference(*inputs, params)

    # --- run 1: default bf16 operands/output (bandwidth-optimal path) --------
    out_bf16 = logic_combine_hg(*inputs, params,
                                combine_embed=combine_embed, out_size=out_size)
    out_bf16 = jax.block_until_ready(out_bf16)
    assert out_bf16.shape == (B, out_size)
    assert jnp.allclose(out_bf16.astype(jnp.float32), ref, atol=5e-2), (
        f"bf16 max abs diff {jnp.max(jnp.abs(out_bf16.astype(jnp.float32) - ref))}")

    # --- run 2: f32 operands, tight tolerance --------------------------------
    out_f32 = logic_combine_hg(*inputs, params,
                               combine_embed=combine_embed, out_size=out_size,
                               operand_dtype=jnp.float32)
    out_f32 = jax.block_until_ready(out_f32)
    assert out_f32.shape == (B, out_size)
    assert jnp.allclose(out_f32, ref, atol=1e-4, rtol=1e-4), (
        f"f32 max abs diff {jnp.max(jnp.abs(out_f32 - ref))}")

    # --- run 3: larger batch exercising the ragged multi-step parallel grid --
    B2 = 200
    inputs2 = _make_inputs(keys[-2], B2, in_size, trianglelogic_num, squarelogic_num)
    out2 = logic_combine_hg(*inputs2, params,
                            combine_embed=combine_embed, out_size=out_size,
                            operand_dtype=jnp.float32, batch_tile=64)
    out2 = jax.block_until_ready(out2)
    ref2 = _reference(*inputs2, params)
    assert out2.shape == (B2, out_size)
    assert jnp.allclose(out2, ref2, atol=1e-4, rtol=1e-4), (
        f"ragged-grid f32 max abs diff {jnp.max(jnp.abs(out2 - ref2))}")

    # TODO(synk): only the combine_type='concat' + triangle&square branch is
    # implemented; the 'product' / partial-signal branches (and the unused
    # _Fcombine5-8 MLPs) follow the same MLP+concat structure and were not
    # instantiated here.
    print("KERNEL_OK")
</pallas_src>

<mosaic_0001>
module attributes {stable_mosaic.version = 11 : i64} {
  func.func @logic_combine_kernel(%arg0: i32, %arg1: memref<8x32xbf16, #tpu.memory_space<vmem>>, %arg2: memref<8x32xbf16, #tpu.memory_space<vmem>>, %arg3: memref<8x192xbf16, #tpu.memory_space<vmem>>, %arg4: memref<8x96xbf16, #tpu.memory_space<vmem>>, %arg5: memref<8x256xbf16, #tpu.memory_space<vmem>>, %arg6: memref<8x128xbf16, #tpu.memory_space<vmem>>, %arg7: memref<1152x128xbf16, #tpu.memory_space<vmem>>, %arg8: memref<8x128xf32, #tpu.memory_space<vmem>>, %arg9: memref<8x128xbf16, #tpu.memory_space<vmem>>) attributes {dimension_semantics = [#tpu.dimension_semantics<parallel>], iteration_bounds = array<i64: 1>, scalar_prefetch = 0 : i64, scratch_operands = 0 : i64, tpu.core_type = #tpu.core_type<tc>, window_params = [{transform_indices = @transform_0, window_bounds = array<i64: 8, 32>}, {transform_indices = @transform_1, window_bounds = array<i64: 8, 32>}, {transform_indices = @transform_2, window_bounds = array<i64: 8, 192>}, {transform_indices = @transform_3, window_bounds = array<i64: 8, 96>}, {transform_indices = @transform_4, window_bounds = array<i64: 8, 256>}, {transform_indices = @transform_5, window_bounds = array<i64: 8, 128>}, {pipeline_mode = #tpu.pipeline_mode<synchronous>, transform_indices = @transform_6, window_bounds = array<i64: 1152, 128>}, {pipeline_mode = #tpu.pipeline_mode<synchronous>, transform_indices = @transform_7, window_bounds = array<i64: 8, 128>}, {transform_indices = @transform_8, window_bounds = array<i64: 8, 128>}]} {
    %c0 = arith.constant 0 : index
    %c0_0 = arith.constant 0 : index
    %0 = vector.load %arg1[%c0, %c0_0] : memref<8x32xbf16, #tpu.memory_space<vmem>>, vector<8x32xbf16>
    %c0_1 = arith.constant 0 : index
    %c0_2 = arith.constant 0 : index
    %1 = vector.load %arg2[%c0_1, %c0_2] : memref<8x32xbf16, #tpu.memory_space<vmem>>, vector<8x32xbf16>
    %2 = arith.mulf %0, %1 : vector<8x32xbf16>
    %c0_3 = arith.constant 0 : index
    %c0_4 = arith.constant 0 : index
    %3 = vector.load %arg3[%c0_3, %c0_4] : memref<8x192xbf16, #tpu.memory_space<vmem>>, vector<8x192xbf16>
    %c0_5 = arith.constant 0 : index
    %c0_6 = arith.constant 0 : index
    %4 = vector.load %arg7[%c0_5, %c0_6] : memref<1152x128xbf16, #tpu.memory_space<vmem>>, vector<192x128xbf16>
    %cst = arith.constant dense<0.000000e+00> : vector<8x128xf32>
    %5 = tpu.matmul %3, %4, %cst {dimension_numbers = #tpu.dot_dimension_numbers<[1], [0], [0], [1], [0, 0, 1, 1], [], []>} : vector<8x192xbf16>, vector<192x128xbf16>, vector<8x128xf32> -> vector<8x128xf32>
    %c0_7 = arith.constant 0 : index
    %c0_8 = arith.constant 0 : index
    %6 = vector.load %arg4[%c0_7, %c0_8] : memref<8x96xbf16, #tpu.memory_space<vmem>>, vector<8x96xbf16>
    %c192 = arith.constant 192 : index
    %c0_9 = arith.constant 0 : index
    %7 = vector.load %arg7[%c192, %c0_9] : memref<1152x128xbf16, #tpu.memory_space<vmem>>, vector<96x128xbf16>
    %cst_10 = arith.constant dense<0.000000e+00> : vector<8x128xf32>
    %8 = tpu.matmul %6, %7, %cst_10 {dimension_numbers = #tpu.dot_dimension_numbers<[1], [0], [0], [1], [0, 0, 1, 1], [], []>} : vector<8x96xbf16>, vector<96x128xbf16>, vector<8x128xf32> -> vector<8x128xf32>
    %9 = arith.addf %5, %8 : vector<8x128xf32>
    %c0_11 = arith.constant 0 : index
    %c0_12 = arith.constant 0 : index
    %10 = vector.load %arg5[%c0_11, %c0_12] : memref<8x256xbf16, #tpu.memory_space<vmem>>, vector<8x256xbf16>
    %c288 = arith.constant 288 : index
    %c0_13 = arith.constant 0 : index
    %11 = vector.load %arg7[%c288, %c0_13] : memref<1152x128xbf16, #tpu.memory_space<vmem>>, vector<256x128xbf16>
    %cst_14 = arith.constant dense<0.000000e+00> : vector<8x128xf32>
    %12 = tpu.matmul %10, %11, %cst_14 {dimension_numbers = #tpu.dot_dimension_numbers<[1], [0], [0], [1], [0, 0, 1, 1], [], []>} : vector<8x256xbf16>, vector<256x128xbf16>, vector<8x128xf32> -> vector<8x128xf32>
    %13 = arith.addf %9, %12 : vector<8x128xf32>
    %c0_15 = arith.constant 0 : index
    %c0_16 = arith.constant 0 : index
    %14 = vector.load %arg6[%c0_15, %c0_16] : memref<8x128xbf16, #tpu.memory_space<vmem>>, vector<8x128xbf16>
    %c544 = arith.constant 544 : index
    %c0_17 = arith.constant 0 : index
    %15 = vector.load %arg7[%c544, %c0_17] : memref<1152x128xbf16, #tpu.memory_space<vmem>>, vector<128x128xbf16>
    %cst_18 = arith.constant dense<0.000000e+00> : vector<8x128xf32>
    %16 = tpu.matmul %14, %15, %cst_18 {dimension_numbers = #tpu.dot_dimension_numbers<[1], [0], [0], [1], [0, 0, 1, 1], [], []>} : vector<8x128xbf16>, vector<128x128xbf16>, vector<8x128xf32> -> vector<8x128xf32>
    %17 = arith.addf %13, %16 : vector<8x128xf32>
    %c0_19 = arith.constant 0 : index
    %c0_20 = arith.constant 0 : index
    %18 = vector.load %arg8[%c0_19, %c0_20] : memref<8x128xf32, #tpu.memory_space<vmem>>, vector<1x128xf32>
    %19 = vector.broadcast %18 : vector<1x128xf32> to vector<8x128xf32>
    %20 = arith.addf %17, %19 : vector<8x128xf32>
    %cst_21 = arith.constant 0.000000e+00 : f32
    %21 = vector.broadcast %cst_21 : f32 to vector<8x128xf32>
    %22 = arith.maximumf %20, %21 : vector<8x128xf32>
    %23 = arith.truncf %22 : vector<8x128xf32> to vector<8x128xbf16>
    %c672 = arith.constant 672 : index
    %c0_22 = arith.constant 0 : index
    %24 = vector.load %arg7[%c672, %c0_22] : memref<1152x128xbf16, #tpu.memory_space<vmem>>, vector<128x128xbf16>
    %cst_23 = arith.constant dense<0.000000e+00> : vector<8x128xf32>
    %25 = tpu.matmul %23, %24, %cst_23 {dimension_numbers = #tpu.dot_dimension_numbers<[1], [0], [0], [1], [0, 0, 1, 1], [], []>} : vector<8x128xbf16>, vector<128x128xbf16>, vector<8x128xf32> -> vector<8x128xf32>
    %c1 = arith.constant 1 : index
    %c0_24 = arith.constant 0 : index
    %26 = vector.load %arg8[%c1, %c0_24] : memref<8x128xf32, #tpu.memory_space<vmem>>, vector<1x128xf32>
    %27 = vector.broadcast %26 : vector<1x128xf32> to vector<8x128xf32>
    %28 = arith.addf %25, %27 : vector<8x128xf32>
    %c2 = arith.constant 2 : index
    %c0_25 = arith.constant 0 : index
    %29 = vector.load %arg8[%c2, %c0_25] : memref<8x128xf32, #tpu.memory_space<vmem>>, vector<1x128xf32>
    %c800 = arith.constant 800 : index
    %c0_26 = arith.constant 0 : index
    %30 = vector.load %arg7[%c800, %c0_26] : memref<1152x128xbf16, #tpu.memory_space<vmem>>, vector<32x128xbf16>
    %cst_27 = arith.constant dense<0.000000e+00> : vector<8x128xf32>
    %31 = tpu.matmul %0, %30, %cst_27 {dimension_numbers = #tpu.dot_dimension_numbers<[1], [0], [0], [1], [0, 0, 1, 1], [], []>} : vector<8x32xbf16>, vector<32x128xbf16>, vector<8x128xf32> -> vector<8x128xf32>
    %32 = vector.broadcast %29 : vector<1x128xf32> to vector<8x128xf32>
    %33 = arith.addf %32, %31 : vector<8x128xf32>
    %c832 = arith.constant 832 : index
    %c0_28 = arith.constant 0 : index
    %34 = vector.load %arg7[%c832, %c0_28] : memref<1152x128xbf16, #tpu.memory_space<vmem>>, vector<32x128xbf16>
    %cst_29 = arith.constant dense<0.000000e+00> : vector<8x128xf32>
    %35 = tpu.matmul %1, %34, %cst_29 {dimension_numbers = #tpu.dot_dimension_numbers<[1], [0], [0], [1], [0, 0, 1, 1], [], []>} : vector<8x32xbf16>, vector<32x128xbf16>, vector<8x128xf32> -> vector<8x128xf32>
    %36 = arith.addf %33, %35 : vector<8x128xf32>
    %c864 = arith.constant 864 : index
    %c0_30 = arith.constant 0 : index
    %37 = vector.load %arg7[%c864, %c0_30] : memref<1152x128xbf16, #tpu.memory_space<vmem>>, vector<32x128xbf16>
    %cst_31 = arith.constant dense<0.000000e+00> : vector<8x128xf32>
    %38 = tpu.matmul %2, %37, %cst_31 {dimension_numbers = #tpu.dot_dimension_numbers<[1], [0], [0], [1], [0, 0, 1, 1], [], []>} : vector<8x32xbf16>, vector<32x128xbf16>, vector<8x128xf32> -> vector<8x128xf32>
    %39 = arith.addf %36, %38 : vector<8x128xf32>
    %40 = arith.truncf %28 : vector<8x128xf32> to vector<8x128xbf16>
    %c896 = arith.constant 896 : index
    %c0_32 = arith.constant 0 : index
    %41 = vector.load %arg7[%c896, %c0_32] : memref<1152x128xbf16, #tpu.memory_space<vmem>>, vector<128x128xbf16>
    %cst_33 = arith.constant dense<0.000000e+00> : vector<8x128xf32>
    %42 = tpu.matmul %40, %41, %cst_33 {dimension_numbers = #tpu.dot_dimension_numbers<[1], [0], [0], [1], [0, 0, 1, 1], [], []>} : vector<8x128xbf16>, vector<128x128xbf16>, vector<8x128xf32> -> vector<8x128xf32>
    %43 = arith.addf %39, %42 : vector<8x128xf32>
    %cst_34 = arith.constant 0.000000e+00 : f32
    %44 = vector.broadcast %cst_34 : f32 to vector<8x128xf32>
    %45 = arith.maximumf %43, %44 : vector<8x128xf32>
    %46 = arith.truncf %45 : vector<8x128xf32> to vector<8x128xbf16>
    %c1024 = arith.constant 1024 : index
    %c0_35 = arith.constant 0 : index
    %47 = vector.load %arg7[%c1024, %c0_35] : memref<1152x128xbf16, #tpu.memory_space<vmem>>, vector<128x128xbf16>
    %cst_36 = arith.constant dense<0.000000e+00> : vector<8x128xf32>
    %48 = tpu.matmul %46, %47, %cst_36 {dimension_numbers = #tpu.dot_dimension_numbers<[1], [0], [0], [1], [0, 0, 1, 1], [], []>} : vector<8x128xbf16>, vector<128x128xbf16>, vector<8x128xf32> -> vector<8x128xf32>
    %c3 = arith.constant 3 : index
    %c0_37 = arith.constant 0 : index
    %49 = vector.load %arg8[%c3, %c0_37] : memref<8x128xf32, #tpu.memory_space<vmem>>, vector<1x128xf32>
    %50 = vector.broadcast %49 : vector<1x128xf32> to vector<8x128xf32>
    %51 = arith.addf %48, %50 : vector<8x128xf32>
    %52 = arith.negf %51 : vector<8x128xf32>
    %53 = math.exp %52 : vector<8x128xf32>
    %cst_38 = arith.constant 1.000000e+00 : f32
    %54 = vector.broadcast %cst_38 : f32 to vector<8x128xf32>
    %55 = arith.addf %54, %53 : vector<8x128xf32>
    %56 = arith.divf %54, %55 : vector<8x128xf32>
    %57 = arith.truncf %56 : vector<8x128xf32> to vector<8x128xbf16>
    %c0_39 = arith.constant 0 : index
    %c0_40 = arith.constant 0 : index
    %58 = vector.load %arg9[%c0_39, %c0_40] : memref<8x128xbf16, #tpu.memory_space<vmem>>, vector<8x128xbf16>
    tpu.vector_store %arg9[%c0_39, %c0_40], %57 {strides = array<i32>} : memref<8x128xbf16, #tpu.memory_space<vmem>>, vector<8x128xbf16>,
    return
  }
  func.func @transform_0(%arg0: i32) -> (i32, i32) {
    %c0_i32 = arith.constant 0 : i32
    %c0_i32_0 = arith.constant 0 : i32
    return %arg0, %c0_i32 : i32, i32
  }
  func.func @transform_1(%arg0: i32) -> (i32, i32) {
    %c0_i32 = arith.constant 0 : i32
    %c0_i32_0 = arith.constant 0 : i32
    return %arg0, %c0_i32 : i32, i32
  }
  func.func @transform_2(%arg0: i32) -> (i32, i32) {
    %c0_i32 = arith.constant 0 : i32
    %c0_i32_0 = arith.constant 0 : i32
    return %arg0, %c0_i32 : i32, i32
  }
  func.func @transform_3(%arg0: i32) -> (i32, i32) {
    %c0_i32 = arith.constant 0 : i32
    %c0_i32_0 = arith.constant 0 : i32
    return %arg0, %c0_i32 : i32, i32
  }
  func.func @transform_4(%arg0: i32) -> (i32, i32) {
    %c0_i32 = arith.constant 0 : i32
    %c0_i32_0 = arith.constant 0 : i32
    return %arg0, %c0_i32 : i32, i32
  }
  func.func @transform_5(%arg0: i32) -> (i32, i32) {
    %c0_i32 = arith.constant 0 : i32
    %c0_i32_0 = arith.constant 0 : i32
    return %arg0, %c0_i32 : i32, i32
  }
  func.func @transform_6(%arg0: i32) -> (i32, i32) {
    %c0_i32 = arith.constant 0 : i32
    %c0_i32_0 = arith.constant 0 : i32
    %c0_i32_1 = arith.constant 0 : i32
    return %c0_i32, %c0_i32_0 : i32, i32
  }
  func.func @transform_7(%arg0: i32) -> (i32, i32) {
    %c0_i32 = arith.constant 0 : i32
    %c0_i32_0 = arith.constant 0 : i32
    %c0_i32_1 = arith.constant 0 : i32
    return %c0_i32, %c0_i32_0 : i32, i32
  }
  func.func @transform_8(%arg0: i32) -> (i32, i32) {
    %c0_i32 = arith.constant 0 : i32
    %c0_i32_0 = arith.constant 0 : i32
    return %arg0, %c0_i32 : i32, i32
  }
}

</mosaic_0001>

<bundles_post_ra>
// kernel: tpu_custom_call.1
= control target key start
LH: loop header
LB: loop body
LE: loop exit
PB: predicated region body
PF: predicated region fallthrough
CT: control target
= control target key end

     0   :  { %13 = vsyncpa [#allocation3], 0  ;;  %s1633_s0 = inlined_call_operand.hbm [shape: bf16[8,32], index: 0, kind: input, shape index: {}]   ;;  %s1634_s1 = inlined_call_operand.hbm [shape: bf16[8,32], index: 1, kind: input, shape index: {}]   ;;  %s1635_s2 = inlined_call_operand.hbm [shape: bf16[8,192], index: 2, kind: input, shape index: {}]   ;;  %s1636_s3 = inlined_call_operand.hbm [shape: bf16[8,96], index: 3, kind: input, shape index: {}]   ;;  %s1637_s4 = inlined_call_operand.hbm [shape: bf16[8,256], index: 4, kind: input, shape index: {}]   ;;  %s1638_s5 = inlined_call_operand.vmem [shape: bf16[8,128], index: 5, kind: input, shape index: {}]   ;;  %s1639_s6 = inlined_call_operand.hbm [shape: bf16[1152,128], index: 6, kind: input, shape index: {}]   ;;  %s1640_s7 = inlined_call_operand.hbm [shape: f32[8,128], index: 7, kind: input, shape index: {}]   ;;  %s1641_s8 = inlined_call_operand.hbm [shape: bf16[8,128], index: 8, kind: output, shape index: {}]  }
   0x1   :  { %14 = vsyncpa [#allocation6], 0 }
   0x2   :  { %15 = vsyncpa [#allocation9], 0 }
   0x3   :  { %16 = vsyncpa [#allocation12], 0  ;;  %s34_s29 = sshll.u32 %s1634_s1, 4  ;;  %s35_s29 = int_to_ptr.hbm [resolvable:$true] %s34_s29 }
   0x4   :  { %17 = vsyncpa [#allocation4], 0  ;;  %s1548_s30 = smov [#allocation5]   ;;  %s56_s12 = sshll.u32 %s1636_s3, 4  ;;  %s57_s12 = int_to_ptr.hbm [resolvable:$true] %s56_s12 }
   0x5   :  { %s36_s9 = sshll.u32 %s1548_s30, 4  ;;  %s1549_s13 = smov [#allocation8]   ;;  %s37_s9 = int_to_ptr.vmem [resolvable:$true] %s36_s9 }
   0x6   :  { %39 = dma.hbm_to_vmem [thread:$0]  %s35_s29, 64, %s37_s9, [#allocation6]  }
   0x7   :  { %s58_s14 = sshll.u32 %s1549_s13, 4  ;;  %s79_s17 = sshll.u32 %s1639_s6, 4  ;;  %s59_s14 = int_to_ptr.vmem [resolvable:$true] %s58_s14  ;;  %s80_s17 = int_to_ptr.hbm [resolvable:$true] %s79_s17 }
   0x8   :  { %61 = dma.hbm_to_vmem [thread:$0]  %s57_s12, 64, %s59_s14, [#allocation9]  }
   0x9   :  { %s1550_s1 = smov [#allocation11]   ;;  %s23_s21 = sshll.u32 %s1633_s0, 4  ;;  %s24_s21 = int_to_ptr.hbm [resolvable:$true] %s23_s21 }
   0xa   :  { %s81_s18 = sshll.u32 %s1550_s1, 4  ;;  %s1551_s22 = smov 64   ;;  %s82_s18 = int_to_ptr.vmem [resolvable:$true] %s81_s18 }
   0xb   :  { %s1552_s3 = smov 4   ;;  %s1553_s23 = smov [#allocation2]  }
   0xc   :  { %87 = dma.hbm_to_vmem [thread:$0]  %s80_s17, 9216, %s82_s18, [#allocation12], %s1551_s22, %s1551_s22, %s1552_s3  }
   0xd   :  { %s25_s24 = sshll.u32 %s1553_s23, 4  ;;  %s45_s6 = sshll.u32 %s1635_s2, 4  ;;  %s26_s24 = int_to_ptr.vmem [resolvable:$true] %s25_s24  ;;  %s46_s6 = int_to_ptr.hbm [resolvable:$true] %s45_s6 }
   0xe   :  { %28 = dma.hbm_to_vmem [thread:$0]  %s24_s21, 64, %s26_s24, [#allocation3]  }
   0xf   :  { %s67_s29 = sshll.u32 %s1637_s4, 4  ;;  %s1554_s30 = smov [#allocation7]   ;;  %s68_s29 = int_to_ptr.hbm [resolvable:$true] %s67_s29 }
  0x10   :  { %s47_s9 = sshll.u32 %s1554_s30, 4  ;;  %s1555_s0 = smov [#allocation10]   ;;  %s48_s9 = int_to_ptr.vmem [resolvable:$true] %s47_s9 }
  0x11   :  { %50 = dma.hbm_to_vmem [thread:$0]  %s46_s6, 128, %s48_s9, [#allocation6]  }
  0x12   :  { %s69_s10 = sshll.u32 %s1555_s0, 4  ;;  %s93_s13 = sshll.u32 %s1640_s7, 4  ;;  %s70_s10 = int_to_ptr.vmem [resolvable:$true] %s69_s10  ;;  %s94_s13 = int_to_ptr.hbm [resolvable:$true] %s93_s13 }
  0x13   :  { %72 = dma.hbm_to_vmem [thread:$0]  %s68_s29, 128, %s70_s10, [#allocation9]  }
  0x14   :  { %s1556_s2 = smov [#allocation13]  }
  0x15   :  { %s95_s14 = sshll.u32 %s1556_s2, 4  ;;  %s96_s14 = int_to_ptr.vmem [resolvable:$true] %s95_s14 }
  0x16   :  { %98 = dma.hbm_to_vmem [thread:$0]  %s94_s13, 128, %s96_s14, [#allocation12]  }
  0x17   :  { %1538 = dma.done.wait [#allocation3], 64  }
  0x18   :  { %1539 = vsyncadd [#allocation3], 4294967232 }
  0x19   :  { %1540 = dma.done.wait [#allocation6], 192  }
  0x1a   :  { %1541 = vsyncadd [#allocation6], 4294967104 }
  0x1b   :  { %1542 = dma.done.wait [#allocation9], 192  }
  0x1c   :  { %1543 = vsyncadd [#allocation9], 4294967104 }
  0x1d   :  { %1544 = dma.done.wait [#allocation12], 9344  }
  0x1e   :  { %1545 = vsyncadd [#allocation12], 4294957952  ;;  %v1273_v0 = vld [vmem:[#allocation11 + $0x88] sm:$0xff]  ;;  %v1267_v1 = vld [vmem:[#allocation11 + $0x58] sm:$0xff]  ;;  %vm303_vm0 = vcmask 523264   ;;  %vm208_vm1 = vcmask 785408  }
  0x1f   :  { %v1263_v2 = vld [vmem:[#allocation11 + $0x38] sm:$0xff]  ;;  %214 = vmatpush.bf16.msra.mxu0 %v1273_v0  ;;  %324 = vmatpush.bf16.msra.mxu2 %v1267_v1  ;;  %v1272_v3 = vld [vmem:[#allocation11 + $0x80] sm:$0xff]  ;;  %v1266_v4 = vld [vmem:[#allocation11 + $0x50] sm:$0xff]  ;;  %vm676_vm2 = vcmask 261120   ;;  %s949_s1 = sshll.u32 %s1641_s8, 4  ;;  %s950_s1 = int_to_ptr.hbm [resolvable:$true] %s949_s1 }
  0x20   :  { %v1281_v5 = vld [vmem:[#allocation11 + $0xc8] sm:$0xff]  ;;  %307 = vmatpush.bf16.msra.mxu1 %v1263_v2  ;;  %v1262_v6 = vld [vmem:[#allocation11 + $0x30] sm:$0xff]  ;;  %v1280_v7 = vld [vmem:[#allocation11 + $0xc0] sm:$0xff] }
  0x21   :  { %469 = vmatpush.bf16.msra.mxu3 %v1281_v5  ;;  %v1271_v8 = vld [vmem:[#allocation11 + $0x78] sm:$0xff]  ;;  %v1265_v9 = vld [vmem:[#allocation11 + $0x48] sm:$0xff]  ;;  %v1270_v14 = vld [vmem:[#allocation11 + $0x70] sm:$0xff] }
  0x22   :  { %v1261_v10 = vld [vmem:[#allocation11 + $0x28] sm:$0xff]  ;;  %v1279_v12 = vld [vmem:[#allocation11 + $0xb8] sm:$0xff]  ;;  %v1264_v15 = vld [vmem:[#allocation11 + $0x40] sm:$0xff] }
  0x23   :  { %215 = vmatpush.bf16.msra.mxu0 %v1272_v3  ;;  %325 = vmatpush.bf16.msra.mxu2 %v1266_v4  ;;  %v134_v11 = vld [vmem:[#allocation7] sm:$0xff]  ;;  %v1260_v16 = vld [vmem:[#allocation11 + $0x20] sm:$0xff]  ;;  %v1259_v21 = vld [vmem:[#allocation11 + $0x18] sm:$0xff] }
  0x24   :  { %308 = vmatpush.bf16.msra.mxu1 %v1262_v6  ;;  %v227_v13 = vunpack.c.h.b16 %v134_v11  ;;  %v1289_v17 = vld [vmem:[#allocation11 + $0x108] sm:$0xff]  ;;  %v1278_v18 = vld [vmem:[#allocation11 + $0xb0] sm:$0xff]  ;;  %v1288_v22 = vld [vmem:[#allocation11 + $0x100] sm:$0xff]  ;;  %v226_v35 = vunpack.c.l.b16 %v134_v11 }
  0x25   :  { %470 = vmatpush.bf16.msra.mxu3 %v1280_v7  ;;  %v1269_v19 = vld [vmem:[#allocation11 + $0x68] sm:$0xff]  ;;  %v1268_v24 = vld [vmem:[#allocation11 + $0x60] sm:$0xff]  ;;  %v1258_v25 = vld [vmem:[#allocation11 + $0x10] sm:$0xff] }
  0x26   :  { %v229_v20 = vpack.c.b16 %v227_v13, %v227_v13  ;;  %v1277_v23 = vld [vmem:[#allocation11 + $0xa8] sm:$0xff]  ;;  %v1287_v26 = vld [vmem:[#allocation11 + $0xf8] sm:$0xff]  ;;  %v1276_v28 = vld [vmem:[#allocation11 + $0xa0] sm:$0xff]  ;;  %v228_v41 = vpack.c.b16 %v226_v35, %v226_v35 }
  0x27   :  { %216 = vmatpush.bf16.msra.mxu0 %v1271_v8  ;;  %326 = vmatpush.bf16.msra.mxu2 %v1265_v9  ;;  %v1297_v27 = vld [vmem:[#allocation11 + $0x148] sm:$0xff]  ;;  %v159_v29 = vld [vmem:[#allocation8] sm:$0xf]  ;;  %v1296_v32 = vld [vmem:[#allocation11 + $0x140] sm:$0xff] }
  0x28   :  { %309 = vmatpush.bf16.msra.mxu1 %v1261_v10  ;;  %v1257_v30 = vld [vmem:[#allocation11 + $0x8] sm:$0xff]  ;;  %v1286_v31 = vld [vmem:[#allocation11 + $0xf0] sm:$0xff]  ;;  %v1275_v33 = vld [vmem:[#allocation11 + $0x98] sm:$0xff] }
  0x29   :  { %471 = vmatpush.bf16.msra.mxu3 %v1279_v12  ;;  %v333_v34 = vld [vmem:[#allocation10] sm:$0xff]  ;;  %v1256_v36 = vld [vmem:[#allocation11] sm:$0xff]  ;;  %v1285_v37 = vld [vmem:[#allocation11 + $0xe8] sm:$0xff] }
  0x2a   :  { %v367_v38 = vunpack.c.l.b16 %v333_v34  ;;  %v1295_v39 = vld [vmem:[#allocation11 + $0x138] sm:$0xff]  ;;  %v1274_v40 = vld [vmem:[#allocation11 + $0x90] sm:$0xff]  ;;  %v1284_v42 = vld [vmem:[#allocation11 + $0xe0] sm:$0xff]  ;;  %v368_v47 = vunpack.c.h.b16 %v333_v34 }
  0x2b   :  { %217 = vmatpush.bf16.msra.mxu0 %v1270_v14  ;;  %327 = vmatpush.bf16.msra.mxu2 %v1264_v15  ;;  %v1294_v44 = vld [vmem:[#allocation11 + $0x130] sm:$0xff]  ;;  %v1283_v45 = vld [vmem:[#allocation11 + $0xd8] sm:$0xff]  ;;  %v1293_v46 = vld [vmem:[#allocation11 + $0x128] sm:$0xff] }
  0x2c   :  { %310 = vmatpush.bf16.msra.mxu1 %v1260_v16  ;;  %v369_v43 = vpack.c.b16 %v367_v38, %v367_v38  ;;  %v1282_v48 = vld [vmem:[#allocation11 + $0xd0] sm:$0xff]  ;;  %v1292_v49 = vld [vmem:[#allocation11 + $0x120] sm:$0xff]  ;;  %v370_v50 = vpack.c.b16 %v368_v47, %v368_v47  ;;  %v1291_v51 = vld [vmem:[#allocation11 + $0x118] sm:$0xff] }
  0x2d   :  { %472 = vmatpush.bf16.msra.mxu3 %v1278_v18  ;;  %v1290_v52 = vld [vmem:[#allocation11 + $0x110] sm:$0xff]  ;;  %v496_v53 = vld [vmem:[%s1638_s5] sm:$0xf]  ;;  %v1305_v54 = vld [vmem:[#allocation11 + $0x188] sm:$0xff]  ;;  %s1557_s5 = smov [#allocation14]  }
  0x2e   :  { %1035 = vmatmul.msk.bf16.vlgmr.msra.gmra.mxu2 %vm303_vm0, %v229_v20  ;;  %v1304_v55 = vld [vmem:[#allocation11 + $0x180] sm:$0xff]  ;;  %v1303_v56 = vld [vmem:[#allocation11 + $0x178] sm:$0xff]  ;;  %v1302_v57 = vld [vmem:[#allocation11 + $0x170] sm:$0xff]  ;;  %s947_s15 = sshll.u32 %s1557_s5, 4  ;;  %s948_s15 = int_to_ptr.vmem [resolvable:$true] %s947_s15 }
  0x2f   :  { %482 = vmatpush.bf16.msrb.mxu2 %v1289_v17  ;;  %218 = vmatpush.bf16.msra.mxu0 %v1269_v19  ;;  %v1301_v58 = vld [vmem:[#allocation11 + $0x168] sm:$0xff]  ;;  %v1300_v59 = vld [vmem:[#allocation11 + $0x160] sm:$0xff]  ;;  %v1299_v62 = vld [vmem:[#allocation11 + $0x158] sm:$0xff] }
  0x30   :  { %311 = vmatpush.bf16.msra.mxu1 %v1259_v21  ;;  %v1298_v63 = vld [vmem:[#allocation11 + $0x150] sm:$0xff]  ;;  %v1307_v2 = vld [vmem:[#allocation11 + $0x198] sm:$0xff]  ;;  %v1309_v5 = vld [vmem:[#allocation11 + $0x1a8] sm:$0xff] }
  0x31   :  { %473 = vmatpush.bf16.msra.mxu3 %v1277_v23  ;;  %v1319_v4 = vld [vmem:[#allocation11 + $0x1f8] sm:$0xff]  ;;  %v1306_v6 = vld [vmem:[#allocation11 + $0x190] sm:$0xff]  ;;  %v1308_v9 = vld [vmem:[#allocation11 + $0x1a0] sm:$0xff] }
  0x32   :  { %v1311_v7 = vld [vmem:[#allocation11 + $0x1b8] sm:$0xff]  ;;  %v1318_v8 = vld [vmem:[#allocation11 + $0x1f0] sm:$0xff]  ;;  %v128_v10 = vld [vmem:[#allocation2] sm:$0xf] }
  0x33   :  { %483 = vmatpush.bf16.msrb.mxu2 %v1288_v22  ;;  %219 = vmatpush.bf16.msra.mxu0 %v1268_v24  ;;  %v1310_v11 = vld [vmem:[#allocation11 + $0x1b0] sm:$0xff]  ;;  %v1317_v12 = vld [vmem:[#allocation11 + $0x1e8] sm:$0xff]  ;;  %v1316_v16 = vld [vmem:[#allocation11 + $0x1e0] sm:$0xff]  ;;  %v130_v17 = vunpack.c.l.bf16 %v128_v10 }
  0x34   :  { %312 = vmatpush.bf16.msra.mxu1 %v1258_v25  ;;  %v129_v15 = vld [vmem:[#allocation5] sm:$0xf]  ;;  %v1315_v19 = vld [vmem:[#allocation11 + $0x1d8] sm:$0xff]  ;;  %v1314_v24 = vld [vmem:[#allocation11 + $0x1d0] sm:$0xff] }
  0x35   :  { %474 = vmatpush.bf16.msra.mxu3 %v1276_v28  ;;  %v131_v18 = vunpack.c.l.bf16 %v129_v15  ;;  %v1312_v38 = vld [vmem:[#allocation11 + $0x1c0] sm:$0xff] }
  0x36   :  { %986 = vmatmul.msk.bf16.vlgmr.msra.gmra.mxu0 %vm208_vm1, %v159_v29 }
  0x37   :  { %484 = vmatpush.bf16.msrb.mxu2 %v1287_v26  ;;  %561 = vmatpush.bf16.msrb.mxu0 %v1297_v27  ;;  %v132_v22 = vmul.f32 %v131_v18, %v130_v17 }
  0x38   :  { %313 = vmatpush.bf16.msra.mxu1 %v1257_v30  ;;  %v1338_v30 = vld [vmem:[#allocation13] ss:$0 sm:$0xff] }
  0x39   :  { %475 = vmatpush.bf16.msra.mxu3 %v1275_v33  ;;  %v133_v27 = vpack.c.bf16 %v132_v22, %v132_v22 }
  0x3b   :  { %485 = vmatpush.bf16.msrb.mxu2 %v1286_v31  ;;  %562 = vmatpush.bf16.msrb.mxu0 %v1296_v32  ;;  %v1313_v31 = vld [vmem:[#allocation11 + $0x1c8] sm:$0xff] }
  0x3c   :  { %314 = vmatpush.bf16.msra.mxu1 %v1256_v36 }
  0x3d   :  { %476 = vmatpush.bf16.msra.mxu3 %v1274_v40  ;;  %v1326_v40 = vld [vmem:[#allocation11 + $0x230] sm:$0xff] }
  0x3f   :  { %486 = vmatpush.bf16.msrb.mxu2 %v1285_v37  ;;  %563 = vmatpush.bf16.msrb.mxu0 %v1295_v39  ;;  %v1327_v39 = vld [vmem:[#allocation11 + $0x238] sm:$0xff] }
  0x40   :  { %315 = vmatmul.bf16.vlgmr.msra.gmra.mxu1 %v228_v41  ;;  %477 = vmatmul.bf16.vlgmr.msra.gmra.mxu3 %v369_v43  ;;  %v1340_v41 = vld [vmem:[#allocation13 + $0x2] ss:$0 sm:$0xff] }
  0x41   :  { %646 = vmatpush.bf16.msrb.mxu1 %v1305_v54  ;;  %686 = vmatpush.bf16.msrb.mxu3 %v1307_v2 }
  0x43   :  { %487 = vmatpush.bf16.msrb.mxu2 %v1284_v42  ;;  %564 = vmatpush.bf16.msrb.mxu0 %v1294_v44  ;;  %v1325_v42 = vld [vmem:[#allocation11 + $0x228] sm:$0xff] }
  0x45   :  { %647 = vmatpush.bf16.msrb.mxu1 %v1304_v55  ;;  %687 = vmatpush.bf16.msrb.mxu3 %v1306_v6 }
  0x47   :  { %488 = vmatpush.bf16.msrb.mxu2 %v1283_v45  ;;  %565 = vmatpush.bf16.msrb.mxu0 %v1293_v46  ;;  %v1324_v46 = vld [vmem:[#allocation11 + $0x220] sm:$0xff] }
  0x49   :  { %648 = vmatpush.bf16.msrb.mxu1 %v1303_v56  ;;  %753 = vmatpush.bf16.msra.mxu3 %v1311_v7 }
  0x4b   :  { %489 = vmatpush.bf16.msrb.mxu2 %v1282_v48  ;;  %566 = vmatpush.bf16.msrb.mxu0 %v1292_v49  ;;  %v1323_v48 = vld [vmem:[#allocation11 + $0x218] sm:$0xff] }
  0x4d   :  { %649 = vmatpush.bf16.msrb.mxu1 %v1302_v57  ;;  %754 = vmatpush.bf16.msra.mxu3 %v1310_v11 }
  0x4e   :  { %490 = vmatmul.bf16.vlgmr.msrb.gmra.mxu2 %v370_v50 }
  0x4f   :  { %567 = vmatpush.bf16.msrb.mxu0 %v1291_v51  ;;  %720 = vmatpush.bf16.msra.mxu2 %v1309_v5  ;;  %v1322_v51 = vld [vmem:[#allocation11 + $0x210] sm:$0xff] }
  0x50   :  { %1172 = vmatmul.msk.bf16.vlgmr.msrb.gmra.mxu3 %vm676_vm2, %v128_v10 }
  0x51   :  { %650 = vmatpush.bf16.msrb.mxu1 %v1301_v58 }
  0x53   :  { %568 = vmatpush.bf16.msrb.mxu0 %v1290_v52  ;;  %721 = vmatpush.bf16.msra.mxu2 %v1308_v9  ;;  %v1339_v52 = vld [vmem:[#allocation13 + $0x1] ss:$0 sm:$0xff] }
  0x55   :  { %651 = vmatpush.bf16.msrb.mxu1 %v1300_v59 }
  0x56   :  { %569 = vmatmul.bf16.vlgmr.msrb.gmra.mxu0 %v496_v53 }
  0x57   :  { %826 = vmatpush.bf16.msra.mxu0 %v1319_v4 }
  0x59   :  { %652 = vmatpush.bf16.msrb.mxu1 %v1299_v62 }
  0x5b   :  { %827 = vmatpush.bf16.msra.mxu0 %v1318_v8 }
  0x5d   :  { %653 = vmatpush.bf16.msrb.mxu1 %v1298_v63 }
  0x5e   :  { %1181 = vmatmul.msk.bf16.vlgmr.msra.gmra.mxu2 %vm676_vm2, %v129_v15 }
  0x5f   :  { %828 = vmatpush.bf16.msra.mxu0 %v1317_v12 }
  0x60   :  { %1190 = vmatmul.msk.bf16.vlgmr.msra.gmra.mxu3 %vm676_vm2, %v133_v27 }
  0x61   :  { %908 = vmatpush.bf16.msra.mxu1 %v1327_v39 }
  0x63   :  { %829 = vmatpush.bf16.msra.mxu0 %v1316_v16 }
  0x65   :  { %909 = vmatpush.bf16.msra.mxu1 %v1326_v40 }
  0x67   :  { %830 = vmatpush.bf16.msra.mxu0 %v1315_v19 }
  0x69   :  { %910 = vmatpush.bf16.msra.mxu1 %v1325_v42 }
  0x6b   :  { %831 = vmatpush.bf16.msra.mxu0 %v1314_v24 }
  0x6d   :  { %911 = vmatpush.bf16.msra.mxu1 %v1324_v46 }
  0x6f   :  { %832 = vmatpush.bf16.msra.mxu0 %v1313_v31 }
  0x71   :  { %912 = vmatpush.bf16.msra.mxu1 %v1323_v48 }
  0x73   :  { %833 = vmatpush.bf16.msra.mxu0 %v1312_v38 }
  0x75   :  { %913 = vmatpush.bf16.msra.mxu1 %v1322_v51 }
  0xb1   :  { %v329_v60 = vpop.f32.mrf.mxu2 }
  0xb3   :  { %v221_v61 = vpop.f32.mrf.mxu0 }
  0xb9   :  { %v331_v0 = vpop.f32.mrf.mxu2 }
  0xbb   :  { %v223_v1 = vpop.f32.mrf.mxu0 }
  0xbd   :  { %v316_v3 = vpop.f32.mrf.mxu1 }
  0xbe   :  { %v317_v20 = vadd.f32 %v316_v3, %v221_v61  ;;  %v1320_v61 = vld [vmem:[#allocation11 + $0x200] sm:$0xff] }
  0xbf   :  { %v1341_v3 = vld [vmem:[#allocation13 + $0x3] ss:$0 sm:$0xff] }
  0xc0   :  { %v330_v25 = vadd.f32 %v329_v60, %v317_v20  ;;  %v1321_v60 = vld [vmem:[#allocation11 + $0x208] sm:$0xff] }
  0xc1   :  { %914 = vmatpush.bf16.msra.mxu1 %v1321_v60 }
  0xc3   :  { %v478_v13 = vpop.f32.mrf.mxu3 }
  0xc5   :  { %v318_v14 = vpop.f32.mrf.mxu1  ;;  %915 = vmatpush.bf16.msra.mxu1 %v1320_v61 }
  0xcb   :  { %v480_v21 = vpop.f32.mrf.mxu3 }
  0xd1   :  { %v491_v23 = vpop.f32.mrf.mxu2 }
  0xd2   :  { %v492_v26 = vadd.f32 %v491_v23, %v478_v13 }
  0xd3   :  { %v570_v29 = vpop.f32.mrf.mxu0  ;;  %v689_v43 = vpop.f32.mrf.mxu3 }
  0xd4   :  { %v495_v28 = vadd.f32 %v492_v26, %v330_v25  ;;  %v694_v44 = vadd.f32 %v1340_v41, %v689_v43 }
  0xd6   :  { %v574_v32 = vadd.f32 %v570_v29, %v495_v28 }
  0xd8   :  { %v577_v33 = vadd.f32 %v1338_v30, %v574_v32 }
  0xd9   :  { %v493_v34 = vpop.f32.mrf.mxu2 }
  0xda   :  { %v578_v35 = vmax.f32 %v577_v33, 0.0 }
  0xdb   :  { %v572_v37 = vpop.f32.mrf.mxu0  ;;  %v691_v49 = vpop.f32.mrf.mxu3 }
  0xdc   :  { %v579_v36 = vpack.c.bf16 %v578_v35, %v578_v35 }
  0xde   :  { %654 = vmatmul.bf16.vlgmr.msrb.gmra.mxu1 %v579_v36 }
  0xe1   :  { %v723_v45 = vpop.f32.mrf.mxu2 }
  0xe2   :  { %v727_v47 = vadd.f32 %v723_v45, %v694_v44 }
  0xe3   :  { %v756_v53 = vpop.f32.mrf.mxu3 }
  0xe4   :  { %v760_v55 = vadd.f32 %v756_v53, %v727_v47 }
  0xe9   :  { %v725_v50 = vpop.f32.mrf.mxu2 }
  0xeb   :  { %v758_v58 = vpop.f32.mrf.mxu3 }
 0x15b   :  { %v655_v54 = vpop.f32.mrf.mxu1 }
 0x15c   :  { %v656_v56 = vadd.f32 %v1339_v52, %v655_v54 }
 0x15e   :  { %v761_v57 = vpack.c.bf16 %v656_v56, %v656_v56 }
 0x160   :  { %834 = vmatmul.bf16.vlgmr.msra.gmra.mxu0 %v761_v57 }
 0x163   :  { %v657_v59 = vpop.f32.mrf.mxu1 }
 0x1dd   :  { %v835_v62 = vpop.f32.mrf.mxu0 }
 0x1de   :  { %v839_v63 = vadd.f32 %v835_v62, %v760_v55 }
 0x1e0   :  { %v840_v0 = vmax.f32 %v839_v63, 0.0 }
 0x1e2   :  { %v841_v1 = vpack.c.bf16 %v840_v0, %v840_v0 }
 0x1e4   :  { %916 = vmatmul.bf16.vlgmr.msra.gmra.mxu1 %v841_v1 }
 0x1e5   :  { %v837_v2 = vpop.f32.mrf.mxu0 }
 0x261   :  { %v917_v4 = vpop.f32.mrf.mxu1 }
 0x262   :  { %v918_v5 = vadd.f32 %v1341_v3, %v917_v4 }
 0x264   :  { %v1255_v6 = vmul.f32 -1.442695, %v918_v5 }
 0x266   :  { %1342 = vpow2.f32 %v1255_v6 }
 0x269   :  { %v919_v7 = vpop.f32.mrf.mxu1 }
 0x26c   :  { %v1343_v8 = vpop.eup %1342 }
 0x26d   :  { %v924_v9 = vadd.f32 1.0, %v1343_v8 }
 0x26f   :  { %1344 = vrcp.f32 %v924_v9  ;;  %v936_v13 = vand.u32 2147483648, %v924_v9  ;;  %v934_v15 = vand.u32 2147483647, %v924_v9  ;;  %vm930_vm4 = vweird.f32 %v924_v9 }
 0x271   :  { %v937_v17 = vor.u32 1.1754944e-38, %v936_v13  ;;  %vm935_vm6 = vcmp.eq.f32.partialorder %v934_v15, 8.507059e+37 }
 0x275   :  { %v1345_v10 = vpop.eup %1344 }
 0x276   :  { %v926_v11 = vmul.f32 %v1345_v10, %v924_v9  ;;  %vm931_vm3 = vweird.f32 %v1345_v10 }
 0x277   :  { %vm932_vm5 = vmor %vm930_vm4, %vm931_vm3 }
 0x278   :  { %v927_v12 = vsub.f32 1.0, %v926_v11 }
 0x27a   :  { %v928_v14 = vmul.f32 %v1345_v10, %v927_v12 }
 0x27c   :  { %v929_v16 = vadd.f32 %v1345_v10, %v928_v14 }
 0x27e   :  { %v933_v18 = vsel %vm932_vm5, %v1345_v10, %v929_v16 }
 0x27f   :  { %v938_v19 = vsel %vm935_vm6, %v937_v17, %v933_v18 }
 0x280   :  { %v940_v20 = vpack.c.bf16 %v938_v19, %v938_v19 }
 0x282   :  { %941 = vst [vmem:[#allocation14] sm:$0xf] %v940_v20 }
 0x283   :  { %952 = dma.vmem_to_hbm [thread:$0]  %s948_s15, 64, %s950_s1, [#allocation4]  }
 0x284   :  { %1546 = dma.done.wait [#allocation4], 64  }
 0x285   :  { %1547 = vsyncadd [#allocation4], 4294967232 }
 0x286   :  { %957 = vsyncpa [#allocation3], 1 }
 0x287   :  { %958 = vsyncpa [#allocation6], 1 }
 0x288   :  { %959 = vsyncpa [#allocation9], 1 }
 0x289   :  { %960 = vsyncpa [#allocation12], 1 }
 0x28a   :  { %961 = vsyncpa [#allocation4], 1 }

</bundles_post_ra>
